<compile_context>
chip_gen: v5e
topology: v5e:2x2
jax: 0.10.0
libtpu: 0.0.40
codegen_flags: <defaults>
</compile_context>

<pallas_src>
import jax
import jax.numpy as jnp
from jax.experimental import pallas as pl
from jax.experimental.pallas import tpu as pltpu


def _se_gate_mul_kernel(g_ref, x_ref, o_ref):
    # g_ref: (1, 1, Cb), x_ref / o_ref: (1, S, Cb).  C is on the lane axis, so
    # the gate broadcast is along sublanes and the multiply uses dense vregs.
    g = g_ref[...].astype(jnp.float32)
    s = jax.nn.sigmoid(g)                              # EUP, f32 for accuracy
    x = x_ref[...].astype(jnp.float32)
    o_ref[...] = (s * x).astype(o_ref.dtype)


def _tensorcores_per_device():
    """Best-effort: chips whose 'parallel' grid axes span 2 TensorCores."""
    try:
        kind = jax.devices()[0].device_kind.lower()
    except Exception:
        return 1
    for tag in ("v4", "v5p", "7x", "v7"):
        if tag in kind:
            return 2
    return 1


def _padded_vmem_bytes(sublanes, lanes, itemsize, num_buffers=2):
    """True (padded) VMEM footprint of one double-buffered block."""
    sub_tile = max(32 // itemsize, 8)        # 8 (f32) / 16 (bf16) / 32 (int8)
    padded_sub = pl.cdiv(sublanes, sub_tile) * sub_tile
    padded_lane = pl.cdiv(lanes, 128) * 128
    return num_buffers * padded_sub * padded_lane * itemsize


def _choose_num_c_blocks(S, C, itemsize, *, requested=None,
                         vmem_budget=24 * 1024 * 1024):
    """Pick how many lane-dense blocks to split C into."""

    def total_bytes(nb):
        c_blk = C // nb
        return (2 * _padded_vmem_bytes(S, c_blk, itemsize)   # x + out blocks
                + _padded_vmem_bytes(1, c_blk, itemsize))    # gate block

    def splittable(nb):
        return C % (nb * 2) == 0 and (C // (nb * 2)) % 128 == 0

    if requested is not None:
        nb = int(requested)
        assert C % nb == 0 and (nb == 1 or (C // nb) % 128 == 0), (
            f"num_c_blocks={nb} must split C={C} into 128-lane multiples")
    else:
        # One block per TensorCore by default: 1 on v5e/v6e, 2 on v4/v5p/v7x.
        nb = _tensorcores_per_device()
        if nb > 1 and not (C % nb == 0 and (C // nb) % 128 == 0):
            nb = 1
        # Split further only if the padded blocks would blow the VMEM budget.
        while total_bytes(nb) > vmem_budget and splittable(nb):
            nb *= 2
    return nb, total_bytes(nb)


def se_gate_mul_channels_last(gate_nc, x_nsc, *, num_c_blocks=None):
    """sigmoid(gate) * x with channels-last inputs.

    gate_nc: (N, C)     -- SE gate (pre-sigmoid).
    x_nsc:   (N, S, C)  -- activations, S = H*W, C on the minor (lane) axis.
    """
    N, S, C = x_nsc.shape
    assert gate_nc.shape == (N, C)
    g = gate_nc.reshape(N, 1, C)

    nb, vmem_need = _choose_num_c_blocks(
        S, C, x_nsc.dtype.itemsize, requested=num_c_blocks)
    c_blk = C // nb

    cost = pl.CostEstimate(
        flops=N * S * C,                         # one multiply per element
        transcendentals=N * C,                   # one sigmoid per gate value
        bytes_accessed=(2 * N * S * C + N * C) * x_nsc.dtype.itemsize,
    )
    vmem_limit = int(min(max(2 * vmem_need, 16 * 1024 * 1024),
                         64 * 1024 * 1024))

    return pl.pallas_call(
        _se_gate_mul_kernel,
        out_shape=jax.ShapeDtypeStruct((N, S, C), x_nsc.dtype),
        grid=(N, nb),
        in_specs=[
            pl.BlockSpec((1, 1, c_blk), lambda n, j: (n, 0, j)),   # gate
            pl.BlockSpec((1, S, c_blk), lambda n, j: (n, 0, j)),   # x
        ],
        out_specs=pl.BlockSpec((1, S, c_blk), lambda n, j: (n, 0, j)),
        compiler_params=pltpu.CompilerParams(
            dimension_semantics=("parallel", "parallel"),
            vmem_limit_bytes=vmem_limit,
        ),
        cost_estimate=cost,
    )(g, x_nsc)


def se_gate_mul_nchw(gate_nchw, x_nchw, *, num_c_blocks=None):
    """sigmoid(gate) * x with NCHW inputs (gate has spatial size 1x1).

    Presents a lane-dense channels-last view to the kernel.  The two transposes
    below are what a channels-last model would not pay.
    TODO(synk): feed NHWC activations directly (se_gate_mul_channels_last) or
    fuse this op into the SE FC producer / consuming conv epilogue.
    """
    N, C, H, W = x_nchw.shape
    assert gate_nchw.shape == (N, C, 1, 1)

    x_cl = jnp.transpose(x_nchw, (0, 2, 3, 1)).reshape(N, H * W, C)
    g = gate_nchw.reshape(N, C)

    out_cl = se_gate_mul_channels_last(g, x_cl, num_c_blocks=num_c_blocks)

    return jnp.transpose(out_cl.reshape(N, H, W, C), (0, 3, 1, 2))


if __name__ == "__main__":
    key = jax.random.PRNGKey(0)
    k1, k2 = jax.random.split(key)

    # Shapes from the PyTorch module: x981 [1,2304,7,7], x985 [1,2304,1,1]
    N, C, H, W = 1, 2304, 7, 7
    x981 = jax.random.normal(k1, (N, C, H, W), dtype=jnp.float32)
    x985 = jax.random.normal(k2, (N, C, 1, 1), dtype=jnp.float32)

    fn = jax.jit(se_gate_mul_nchw)
    out = jax.block_until_ready(fn(x985, x981))

    # Reference check (plain JAX, same semantics as the torch module)
    ref = jax.nn.sigmoid(x985) * x981
    assert out.shape == (N, C, H, W)
    assert jnp.allclose(out, ref, atol=1e-5, rtol=1e-5)

    print("KERNEL_OK")
</pallas_src>

<mosaic_0001>
module attributes {stable_mosaic.version = 11 : i64} {
  func.func @_se_gate_mul_kernel(%arg0: i32, %arg1: i32, %arg2: memref<1x1x2304xf32, #tpu.memory_space<vmem>>, %arg3: memref<1x49x2304xf32, #tpu.memory_space<vmem>>, %arg4: memref<1x49x2304xf32, #tpu.memory_space<vmem>>) attributes {dimension_semantics = [#tpu.dimension_semantics<parallel>, #tpu.dimension_semantics<parallel>], iteration_bounds = array<i64: 1, 1>, scalar_prefetch = 0 : i64, scratch_operands = 0 : i64, tpu.core_type = #tpu.core_type<tc>, window_params = [{transform_indices = @transform_0, window_bounds = array<i64: 1, 1, 2304>}, {transform_indices = @transform_1, window_bounds = array<i64: 1, 49, 2304>}, {transform_indices = @transform_2, window_bounds = array<i64: 1, 49, 2304>}]} {
    %c0 = arith.constant 0 : index
    %c0_0 = arith.constant 0 : index
    %c0_1 = arith.constant 0 : index
    %0 = vector.load %arg2[%c0, %c0_0, %c0_1] : memref<1x1x2304xf32, #tpu.memory_space<vmem>>, vector<1x1x2304xf32>
    %1 = arith.negf %0 : vector<1x1x2304xf32>
    %2 = math.exp %1 : vector<1x1x2304xf32>
    %cst = arith.constant 1.000000e+00 : f32
    %3 = vector.broadcast %cst : f32 to vector<1x1x2304xf32>
    %4 = arith.addf %3, %2 : vector<1x1x2304xf32>
    %5 = arith.divf %3, %4 : vector<1x1x2304xf32>
    %c0_2 = arith.constant 0 : index
    %c0_3 = arith.constant 0 : index
    %c0_4 = arith.constant 0 : index
    %6 = vector.load %arg3[%c0_2, %c0_3, %c0_4] : memref<1x49x2304xf32, #tpu.memory_space<vmem>>, vector<1x49x2304xf32>
    %7 = vector.broadcast %5 : vector<1x1x2304xf32> to vector<1x49x2304xf32>
    %8 = arith.mulf %7, %6 : vector<1x49x2304xf32>
    %c0_5 = arith.constant 0 : index
    %c0_6 = arith.constant 0 : index
    %c0_7 = arith.constant 0 : index
    %9 = vector.load %arg4[%c0_5, %c0_6, %c0_7] : memref<1x49x2304xf32, #tpu.memory_space<vmem>>, vector<1x49x2304xf32>
    tpu.vector_store %arg4[%c0_5, %c0_6, %c0_7], %8 {strides = array<i32>} : memref<1x49x2304xf32, #tpu.memory_space<vmem>>, vector<1x49x2304xf32>,
    return
  }
  func.func @transform_0(%arg0: i32, %arg1: i32) -> (i32, i32, i32) {
    %c0_i32 = arith.constant 0 : i32
    %c0_i32_0 = arith.constant 0 : i32
    return %arg0, %c0_i32, %arg1 : i32, i32, i32
  }
  func.func @transform_1(%arg0: i32, %arg1: i32) -> (i32, i32, i32) {
    %c0_i32 = arith.constant 0 : i32
    %c0_i32_0 = arith.constant 0 : i32
    return %arg0, %c0_i32, %arg1 : i32, i32, i32
  }
  func.func @transform_2(%arg0: i32, %arg1: i32) -> (i32, i32, i32) {
    %c0_i32 = arith.constant 0 : i32
    %c0_i32_0 = arith.constant 0 : i32
    return %arg0, %c0_i32, %arg1 : i32, i32, i32
  }
}

</mosaic_0001>

<bundles_post_ra>
// kernel: se_gate_mul_nchw.1
= control target key start
LH: loop header
LB: loop body
LE: loop exit
PB: predicated region body
PF: predicated region fallthrough
CT: control target
= control target key end

     0   :  { %s1487_s0 = inlined_call_operand.vmem [shape: f32[1,1,2304], index: 0, kind: input, shape index: {}]   ;;  %s1488_s1 = inlined_call_operand.vmem [shape: f32[1,49,2304], index: 1, kind: input, shape index: {}]   ;;  %s1489_s2 = inlined_call_operand.vmem [shape: f32[1,49,2304], index: 2, kind: output, shape index: {}]  }
   0x1   :  { %v11_v0 = vld [vmem:[%s1487_s0] sm:$0xff]  ;;  %v12_v2 = vld [vmem:[%s1487_s0 + $0x8] sm:$0xff]  ;;  %v13_v3 = vld [vmem:[%s1487_s0 + $0x10] sm:$0x3] }
   0x2   :  { %v492_v1 = vmul.f32 -1.442695, %v11_v0  ;;  %v493_v4 = vmul.f32 -1.442695, %v12_v2  ;;  %v494_v5 = vmul.f32 -1.442695, %v13_v3 }
   0x3   :  { %v71_v31 = vld [vmem:[%s1488_s1] sm:$0xff]  ;;  %v72_v32 = vld [vmem:[%s1488_s1 + $0x8] sm:$0xff]  ;;  %v73_v33 = vld [vmem:[%s1488_s1 + $0x10] sm:$0xff] }
   0x4   :  { %495 = vpow2.f32 %v492_v1  ;;  %v74_v39 = vld [vmem:[%s1488_s1 + $0x18] sm:$0xff]  ;;  %v75_v41 = vld [vmem:[%s1488_s1 + $0x20] sm:$0xff]  ;;  %v76_v50 = vld [vmem:[%s1488_s1 + $0x28] sm:$0xff] }
   0x5   :  { %497 = vpow2.f32 %v493_v4  ;;  %v77_v51 = vld [vmem:[%s1488_s1 + $0x30] sm:$0xff]  ;;  %v78_v57 = vld [vmem:[%s1488_s1 + $0x38] sm:$0xff]  ;;  %v79_v63 = vld [vmem:[%s1488_s1 + $0x40] sm:$0xff] }
   0x6   :  { %499 = vpow2.f32 %v494_v5  ;;  %v80_v1 = vld [vmem:[%s1488_s1 + $0x48] sm:$0xff]  ;;  %v90_v35 = vld [vmem:[%s1488_s1 + $0x98] sm:$0xff] }
   0xa   :  { %v496_v6 = vpop.eup %495 }
   0xb   :  { %v23_v7 = vadd.f32 1.0, %v496_v6  ;;  %v498_v8 = vpop.eup %497  ;;  %v81_v6 = vld [vmem:[%s1488_s1 + $0x50] sm:$0xff] }
   0xc   :  { %v500_v9 = vpop.eup %499  ;;  %v24_v10 = vadd.f32 1.0, %v498_v8 }
   0xd   :  { %501 = vrcp.f32 %v23_v7  ;;  %v531_v11 = vadd.f32 1.0, %v500_v9  ;;  %v37_v14 = vand.u32 2147483648, %v23_v7  ;;  %vm31_vm0 = vweird.f32 %v23_v7 }
   0xe   :  { %503 = vrcp.f32 %v24_v10  ;;  %v35_v17 = vand.u32 2147483647, %v23_v7  ;;  %v50_v24 = vand.u32 2147483647, %v24_v10  ;;  %v52_v27 = vand.u32 2147483648, %v24_v10 }
   0xf   :  { %505 = vrcp.f32 %v531_v11  ;;  %v38_v22 = vor.u32 1.1754944e-38, %v37_v14  ;;  %vm46_vm4 = vweird.f32 %v24_v10  ;;  %vm61_vm8 = vweird.f32 %v531_v11  ;;  %v83_v14 = vld [vmem:[%s1488_s1 + $0x60] sm:$0xff] }
  0x10   :  { %vm36_vm3 = vcmp.eq.f32.partialorder %v35_v17, 8.507059e+37  ;;  %vm547_vm6 = vcmp.eq.f32.partialorder %v50_v24, 8.507059e+37  ;;  %v53_v46 = vor.u32 1.1754944e-38, %v52_v27  ;;  %v67_v55 = vand.u32 2147483648, %v531_v11  ;;  %v84_v17 = vld [vmem:[%s1488_s1 + $0x68] sm:$0xff] }
  0x11   :  { %v65_v59 = vand.u32 2147483647, %v531_v11 }
  0x12   :  { %v68_v9 = vor.u32 1.1754944e-38, %v67_v55  ;;  %v96_v55 = vld [vmem:[%s1488_s1 + $0xc8] sm:$0xff] }
  0x13   :  { %v502_v12 = vpop.eup %501  ;;  %vm66_vm11 = vcmp.eq.f32.partialorder %v65_v59, 8.507059e+37  ;;  %v98_v59 = vld [vmem:[%s1488_s1 + $0xd8] sm:$0xff] }
  0x14   :  { %v27_v13 = vmul.f32 %v502_v12, %v23_v7  ;;  %v504_v15 = vpop.eup %503  ;;  %vm32_vm1 = vweird.f32 %v502_v12 }
  0x15   :  { %v534_v18 = vpop.eup %505  ;;  %v42_v19 = vmul.f32 %v504_v15, %v24_v10  ;;  %vm33_vm2 = vmor %vm31_vm0, %vm32_vm1  ;;  %vm47_vm5 = vweird.f32 %v504_v15 }
  0x16   :  { %v28_v16 = vsub.f32 1.0, %v27_v13  ;;  %v57_v21 = vmul.f32 %v534_v18, %v531_v11  ;;  %vm573_vm7 = vmor %vm46_vm4, %vm47_vm5  ;;  %vm62_vm9 = vweird.f32 %v534_v18 }
  0x17   :  { %v43_v23 = vsub.f32 1.0, %v42_v19  ;;  %vm639_vm10 = vmor %vm61_vm8, %vm62_vm9 }
  0x18   :  { %v29_v20 = vmul.f32 %v502_v12, %v28_v16  ;;  %v58_v29 = vsub.f32 1.0, %v57_v21 }
  0x19   :  { %v44_v26 = vmul.f32 %v504_v15, %v43_v23 }
  0x1a   :  { %v30_v25 = vadd.f32 %v502_v12, %v29_v20  ;;  %v59_v52 = vmul.f32 %v534_v18, %v58_v29 }
  0x1b   :  { %v45_v34 = vadd.f32 %v504_v15, %v44_v26 }
  0x1c   :  { %v34_v28 = vsel %vm33_vm2, %v502_v12, %v30_v25  ;;  %v60_v4 = vadd.f32 %v534_v18, %v59_v52  ;;  %v82_v12 = vld [vmem:[%s1488_s1 + $0x58] sm:$0xff]  ;;  %v95_v52 = vld [vmem:[%s1488_s1 + $0xc0] sm:$0xff] }
  0x1d   :  { %v39_v30 = vsel %vm36_vm3, %v38_v22, %v34_v28  ;;  %v49_v58 = vsel %vm573_vm7, %v504_v15, %v45_v34  ;;  %v85_v22 = vld [vmem:[%s1488_s1 + $0x70] sm:$0xff]  ;;  %v87_v28 = vld [vmem:[%s1488_s1 + $0x80] sm:$0xff] }
  0x1e   :  { %v551_v36 = vperm.slane %v39_v30, 0  ;;  %v553_v37 = vperm.slane %v39_v30, 1  ;;  %v555_v38 = vperm.slane %v39_v30, 2  ;;  %v560_v40 = vperm.slane %v39_v30, 3 }
  0x1f   :  { %v565_v42 = vperm.slane %v39_v30, 4  ;;  %v567_v43 = vperm.slane %v39_v30, 5  ;;  %v569_v44 = vperm.slane %v39_v30, 6  ;;  %v588_v54 = vperm.slane %v39_v30, 7 }
  0x20   :  { %v236_v47 = vmul.f32 %v551_v36, %v71_v31  ;;  %v237_v48 = vmul.f32 %v553_v37, %v72_v32  ;;  %v238_v49 = vmul.f32 %v555_v38, %v73_v33  ;;  %v239_v53 = vmul.f32 %v560_v40, %v74_v39  ;;  %v88_v31 = vld [vmem:[%s1488_s1 + $0x88] sm:$0xff]  ;;  %v89_v33 = vld [vmem:[%s1488_s1 + $0x90] sm:$0xff] }
  0x21   :  { %v240_v56 = vmul.f32 %v565_v42, %v75_v41  ;;  %v241_v60 = vmul.f32 %v567_v43, %v76_v50  ;;  %v242_v61 = vmul.f32 %v569_v44, %v77_v51  ;;  %v54_v62 = vsel %vm547_vm6, %v53_v46, %v49_v58  ;;  %v91_v41 = vld [vmem:[%s1488_s1 + $0xa0] sm:$0xff]  ;;  %v92_v46 = vld [vmem:[%s1488_s1 + $0xa8] sm:$0xff]  ;;  %v94_v50 = vld [vmem:[%s1488_s1 + $0xb8] sm:$0xff] }
  0x22   :  { %362 = vst [vmem:[%s1489_s2] sm:$0xff] %v236_v47  ;;  %v616_v0 = vperm.slane %v54_v62, 0  ;;  %v621_v2 = vperm.slane %v54_v62, 1  ;;  %v623_v3 = vperm.slane %v54_v62, 2  ;;  %v243_v5 = vmul.f32 %v588_v54, %v78_v57  ;;  %v97_v57 = vld [vmem:[%s1488_s1 + $0xd0] sm:$0xff] }
  0x23   :  { %363 = vst [vmem:[%s1489_s2 + $0x8] sm:$0xff] %v237_v48  ;;  %v633_v7 = vperm.slane %v54_v62, 3  ;;  %v650_v13 = vperm.slane %v54_v62, 4  ;;  %v659_v15 = vperm.slane %v54_v62, 5  ;;  %v668_v19 = vperm.slane %v54_v62, 6  ;;  %v93_v48 = vld [vmem:[%s1488_s1 + $0xb0] sm:$0xff] }
  0x24   :  { %364 = vst [vmem:[%s1489_s2 + $0x10] sm:$0xff] %v238_v49  ;;  %v244_v10 = vmul.f32 %v616_v0, %v79_v63  ;;  %v245_v11 = vmul.f32 %v621_v2, %v80_v1  ;;  %v246_v16 = vmul.f32 %v623_v3, %v81_v6  ;;  %v64_v20 = vsel %vm639_vm10, %v534_v18, %v60_v4  ;;  %v86_v18 = vld [vmem:[%s1488_s1 + $0x78] sm:$0xff]  ;;  %v100_v63 = vld [vmem:[%s1488_s1 + $0xe8] sm:$0xff]  ;;  %v101_v4 = vld [vmem:[%s1488_s1 + $0xf0] sm:$0xff] }
  0x25   :  { %365 = vst [vmem:[%s1489_s2 + $0x18] sm:$0xff] %v239_v53  ;;  %v247_v21 = vmul.f32 %v633_v7, %v82_v12  ;;  %v680_v23 = vperm.slane %v54_v62, 7  ;;  %v69_v24 = vsel %vm66_vm11, %v68_v9, %v64_v20  ;;  %v248_v25 = vmul.f32 %v650_v13, %v83_v14  ;;  %v102_v6 = vld [vmem:[%s1488_s1 + $0xf8] sm:$0xff]  ;;  %v103_v9 = vld [vmem:[%s1488_s1 + $0x100] sm:$0xff]  ;;  %v104_v12 = vld [vmem:[%s1488_s1 + $0x108] sm:$0xff] }
  0x26   :  { %366 = vst [vmem:[%s1489_s2 + $0x20] sm:$0xff] %v240_v56  ;;  %v689_v26 = vperm.slane %v69_v24, 0  ;;  %v249_v27 = vmul.f32 %v659_v15, %v84_v17  ;;  %v698_v29 = vperm.slane %v69_v24, 1  ;;  %v250_v30 = vmul.f32 %v668_v19, %v85_v22  ;;  %v105_v14 = vld [vmem:[%s1488_s1 + $0x110] sm:$0xff]  ;;  %v106_v17 = vld [vmem:[%s1488_s1 + $0x118] sm:$0xff]  ;;  %v108_v24 = vld [vmem:[%s1488_s1 + $0x128] sm:$0xff] }
  0x27   :  { %367 = vst [vmem:[%s1489_s2 + $0x28] sm:$0xff] %v241_v60  ;;  %v251_v32 = vmul.f32 %v680_v23, %v86_v18  ;;  %v254_v45 = vmul.f32 %v551_v36, %v89_v33  ;;  %v255_v47 = vmul.f32 %v553_v37, %v90_v35  ;;  %v256_v49 = vmul.f32 %v555_v38, %v91_v41  ;;  %v109_v18 = vld [vmem:[%s1488_s1 + $0x130] sm:$0xff]  ;;  %v112_v33 = vld [vmem:[%s1488_s1 + $0x148] sm:$0xff]  ;;  %v114_v41 = vld [vmem:[%s1488_s1 + $0x158] sm:$0xff] }
  0x28   :  { %368 = vst [vmem:[%s1489_s2 + $0x30] sm:$0xff] %v242_v61  ;;  %v252_v34 = vmul.f32 %v689_v26, %v87_v28  ;;  %v253_v39 = vmul.f32 %v698_v29, %v88_v31  ;;  %v257_v51 = vmul.f32 %v560_v40, %v92_v46  ;;  %v258_v53 = vmul.f32 %v565_v42, %v93_v48  ;;  %v99_v61 = vld [vmem:[%s1488_s1 + $0xe0] sm:$0xff]  ;;  %v110_v28 = vld [vmem:[%s1488_s1 + $0x138] sm:$0xff]  ;;  %v113_v35 = vld [vmem:[%s1488_s1 + $0x150] sm:$0xff] }
  0x29   :  { %369 = vst [vmem:[%s1489_s2 + $0x38] sm:$0xff] %v243_v5  ;;  %v259_v56 = vmul.f32 %v567_v43, %v94_v50  ;;  %v260_v58 = vmul.f32 %v569_v44, %v95_v52  ;;  %v261_v60 = vmul.f32 %v588_v54, %v96_v55  ;;  %v262_v62 = vmul.f32 %v616_v0, %v97_v57  ;;  %v111_v31 = vld [vmem:[%s1488_s1 + $0x140] sm:$0xff]  ;;  %v116_v48 = vld [vmem:[%s1488_s1 + $0x168] sm:$0xff]  ;;  %v117_v50 = vld [vmem:[%s1488_s1 + $0x170] sm:$0xff] }
  0x2a   :  { %370 = vst [vmem:[%s1489_s2 + $0x40] sm:$0xff] %v244_v10  ;;  %v263_v1 = vmul.f32 %v621_v2, %v98_v59  ;;  %v264_v5 = vmul.f32 %v623_v3, %v99_v61  ;;  %v265_v8 = vmul.f32 %v633_v7, %v100_v63  ;;  %v266_v10 = vmul.f32 %v650_v13, %v101_v4  ;;  %v115_v46 = vld [vmem:[%s1488_s1 + $0x160] sm:$0xff]  ;;  %v118_v52 = vld [vmem:[%s1488_s1 + $0x178] sm:$0xff]  ;;  %v120_v57 = vld [vmem:[%s1488_s1 + $0x188] sm:$0xff] }
  0x2b   :  { %371 = vst [vmem:[%s1489_s2 + $0x48] sm:$0xff] %v245_v11  ;;  %v267_v11 = vmul.f32 %v659_v15, %v102_v6  ;;  %v269_v20 = vmul.f32 %v680_v23, %v104_v12  ;;  %v270_v22 = vmul.f32 %v689_v26, %v105_v14  ;;  %v119_v55 = vld [vmem:[%s1488_s1 + $0x180] sm:$0xff]  ;;  %v121_v59 = vld [vmem:[%s1488_s1 + $0x190] sm:$0xff]  ;;  %v122_v61 = vld [vmem:[%s1488_s1 + $0x198] sm:$0xff] }
  0x2c   :  { %372 = vst [vmem:[%s1489_s2 + $0x50] sm:$0xff] %v246_v16  ;;  %v268_v16 = vmul.f32 %v668_v19, %v103_v9  ;;  %v123_v63 = vld [vmem:[%s1488_s1 + $0x1a0] sm:$0xff]  ;;  %v124_v4 = vld [vmem:[%s1488_s1 + $0x1a8] sm:$0xff]  ;;  %v125_v6 = vld [vmem:[%s1488_s1 + $0x1b0] sm:$0xff] }
  0x2d   :  { %373 = vst [vmem:[%s1489_s2 + $0x58] sm:$0xff] %v247_v21  ;;  %v107_v21 = vld [vmem:[%s1488_s1 + $0x120] sm:$0xff]  ;;  %v126_v9 = vld [vmem:[%s1488_s1 + $0x1b8] sm:$0xff]  ;;  %v128_v14 = vld [vmem:[%s1488_s1 + $0x1c8] sm:$0xff] }
  0x2e   :  { %374 = vst [vmem:[%s1489_s2 + $0x60] sm:$0xff] %v248_v25  ;;  %v271_v25 = vmul.f32 %v698_v29, %v106_v17  ;;  %v127_v12 = vld [vmem:[%s1488_s1 + $0x1c0] sm:$0xff]  ;;  %v129_v17 = vld [vmem:[%s1488_s1 + $0x1d0] sm:$0xff] }
  0x2f   :  { %375 = vst [vmem:[%s1489_s2 + $0x68] sm:$0xff] %v249_v27  ;;  %v272_v27 = vmul.f32 %v551_v36, %v107_v21  ;;  %v130_v21 = vld [vmem:[%s1488_s1 + $0x1d8] sm:$0xff] }
  0x30   :  { %376 = vst [vmem:[%s1489_s2 + $0x70] sm:$0xff] %v250_v30  ;;  %v273_v30 = vmul.f32 %v553_v37, %v108_v24  ;;  %v131_v24 = vld [vmem:[%s1488_s1 + $0x1e0] sm:$0xff] }
  0x31   :  { %377 = vst [vmem:[%s1489_s2 + $0x78] sm:$0xff] %v251_v32  ;;  %v274_v32 = vmul.f32 %v555_v38, %v109_v18  ;;  %v132_v18 = vld [vmem:[%s1488_s1 + $0x1e8] sm:$0xff] }
  0x32   :  { %378 = vst [vmem:[%s1489_s2 + $0x80] sm:$0xff] %v252_v34  ;;  %v275_v34 = vmul.f32 %v560_v40, %v110_v28  ;;  %v133_v28 = vld [vmem:[%s1488_s1 + $0x1f0] sm:$0xff] }
  0x33   :  { %379 = vst [vmem:[%s1489_s2 + $0x88] sm:$0xff] %v253_v39  ;;  %v276_v39 = vmul.f32 %v565_v42, %v111_v31  ;;  %v134_v31 = vld [vmem:[%s1488_s1 + $0x1f8] sm:$0xff] }
  0x34   :  { %380 = vst [vmem:[%s1489_s2 + $0x90] sm:$0xff] %v254_v45  ;;  %v277_v45 = vmul.f32 %v567_v43, %v112_v33  ;;  %v135_v33 = vld [vmem:[%s1488_s1 + $0x200] sm:$0xff] }
  0x35   :  { %381 = vst [vmem:[%s1489_s2 + $0x98] sm:$0xff] %v255_v47  ;;  %v278_v47 = vmul.f32 %v569_v44, %v113_v35  ;;  %v136_v35 = vld [vmem:[%s1488_s1 + $0x208] sm:$0xff] }
  0x36   :  { %382 = vst [vmem:[%s1489_s2 + $0xa0] sm:$0xff] %v256_v49  ;;  %v279_v49 = vmul.f32 %v588_v54, %v114_v41  ;;  %v137_v41 = vld [vmem:[%s1488_s1 + $0x210] sm:$0xff] }
  0x37   :  { %383 = vst [vmem:[%s1489_s2 + $0xa8] sm:$0xff] %v257_v51  ;;  %v280_v51 = vmul.f32 %v616_v0, %v115_v46  ;;  %v138_v46 = vld [vmem:[%s1488_s1 + $0x218] sm:$0xff] }
  0x38   :  { %384 = vst [vmem:[%s1489_s2 + $0xb0] sm:$0xff] %v258_v53  ;;  %v281_v53 = vmul.f32 %v621_v2, %v116_v48  ;;  %v139_v48 = vld [vmem:[%s1488_s1 + $0x220] sm:$0xff] }
  0x39   :  { %385 = vst [vmem:[%s1489_s2 + $0xb8] sm:$0xff] %v259_v56  ;;  %v282_v56 = vmul.f32 %v623_v3, %v117_v50  ;;  %v140_v50 = vld [vmem:[%s1488_s1 + $0x228] sm:$0xff] }
  0x3a   :  { %386 = vst [vmem:[%s1489_s2 + $0xc0] sm:$0xff] %v260_v58  ;;  %v283_v58 = vmul.f32 %v633_v7, %v118_v52  ;;  %v141_v52 = vld [vmem:[%s1488_s1 + $0x230] sm:$0xff] }
  0x3b   :  { %387 = vst [vmem:[%s1489_s2 + $0xc8] sm:$0xff] %v261_v60  ;;  %v284_v60 = vmul.f32 %v650_v13, %v119_v55  ;;  %v142_v55 = vld [vmem:[%s1488_s1 + $0x238] sm:$0xff] }
  0x3c   :  { %388 = vst [vmem:[%s1489_s2 + $0xd0] sm:$0xff] %v262_v62  ;;  %v285_v62 = vmul.f32 %v659_v15, %v120_v57  ;;  %v143_v57 = vld [vmem:[%s1488_s1 + $0x240] sm:$0xff] }
  0x3d   :  { %389 = vst [vmem:[%s1489_s2 + $0xd8] sm:$0xff] %v263_v1  ;;  %v286_v1 = vmul.f32 %v668_v19, %v121_v59  ;;  %v144_v59 = vld [vmem:[%s1488_s1 + $0x248] sm:$0xff] }
  0x3e   :  { %390 = vst [vmem:[%s1489_s2 + $0xe0] sm:$0xff] %v264_v5  ;;  %v287_v5 = vmul.f32 %v680_v23, %v122_v61  ;;  %v145_v61 = vld [vmem:[%s1488_s1 + $0x250] sm:$0xff] }
  0x3f   :  { %391 = vst [vmem:[%s1489_s2 + $0xe8] sm:$0xff] %v265_v8  ;;  %v288_v8 = vmul.f32 %v689_v26, %v123_v63  ;;  %v146_v63 = vld [vmem:[%s1488_s1 + $0x258] sm:$0xff] }
  0x40   :  { %392 = vst [vmem:[%s1489_s2 + $0xf0] sm:$0xff] %v266_v10  ;;  %v289_v10 = vmul.f32 %v698_v29, %v124_v4  ;;  %v147_v4 = vld [vmem:[%s1488_s1 + $0x260] sm:$0xff] }
  0x41   :  { %393 = vst [vmem:[%s1489_s2 + $0xf8] sm:$0xff] %v267_v11  ;;  %v290_v11 = vmul.f32 %v551_v36, %v125_v6  ;;  %v148_v6 = vld [vmem:[%s1488_s1 + $0x268] sm:$0xff] }
  0x42   :  { %394 = vst [vmem:[%s1489_s2 + $0x100] sm:$0xff] %v268_v16  ;;  %v291_v16 = vmul.f32 %v553_v37, %v126_v9  ;;  %v149_v9 = vld [vmem:[%s1488_s1 + $0x270] sm:$0xff] }
  0x43   :  { %395 = vst [vmem:[%s1489_s2 + $0x108] sm:$0xff] %v269_v20  ;;  %v292_v20 = vmul.f32 %v555_v38, %v127_v12  ;;  %v150_v12 = vld [vmem:[%s1488_s1 + $0x278] sm:$0xff] }
  0x44   :  { %396 = vst [vmem:[%s1489_s2 + $0x110] sm:$0xff] %v270_v22  ;;  %v293_v22 = vmul.f32 %v560_v40, %v128_v14  ;;  %v151_v14 = vld [vmem:[%s1488_s1 + $0x280] sm:$0xff] }
  0x45   :  { %397 = vst [vmem:[%s1489_s2 + $0x118] sm:$0xff] %v271_v25  ;;  %v294_v25 = vmul.f32 %v565_v42, %v129_v17  ;;  %v152_v17 = vld [vmem:[%s1488_s1 + $0x288] sm:$0xff] }
  0x46   :  { %398 = vst [vmem:[%s1489_s2 + $0x120] sm:$0xff] %v272_v27  ;;  %v295_v27 = vmul.f32 %v567_v43, %v130_v21  ;;  %v153_v21 = vld [vmem:[%s1488_s1 + $0x290] sm:$0xff] }
  0x47   :  { %399 = vst [vmem:[%s1489_s2 + $0x128] sm:$0xff] %v273_v30  ;;  %v296_v30 = vmul.f32 %v569_v44, %v131_v24  ;;  %v154_v24 = vld [vmem:[%s1488_s1 + $0x298] sm:$0xff] }
  0x48   :  { %400 = vst [vmem:[%s1489_s2 + $0x130] sm:$0xff] %v274_v32  ;;  %v297_v32 = vmul.f32 %v588_v54, %v132_v18  ;;  %v155_v18 = vld [vmem:[%s1488_s1 + $0x2a0] sm:$0xff] }
  0x49   :  { %401 = vst [vmem:[%s1489_s2 + $0x138] sm:$0xff] %v275_v34  ;;  %v298_v34 = vmul.f32 %v616_v0, %v133_v28  ;;  %v156_v28 = vld [vmem:[%s1488_s1 + $0x2a8] sm:$0xff] }
  0x4a   :  { %402 = vst [vmem:[%s1489_s2 + $0x140] sm:$0xff] %v276_v39  ;;  %v299_v39 = vmul.f32 %v621_v2, %v134_v31  ;;  %v157_v31 = vld [vmem:[%s1488_s1 + $0x2b0] sm:$0xff] }
  0x4b   :  { %403 = vst [vmem:[%s1489_s2 + $0x148] sm:$0xff] %v277_v45  ;;  %v300_v45 = vmul.f32 %v623_v3, %v135_v33  ;;  %v158_v33 = vld [vmem:[%s1488_s1 + $0x2b8] sm:$0xff] }
  0x4c   :  { %404 = vst [vmem:[%s1489_s2 + $0x150] sm:$0xff] %v278_v47  ;;  %v301_v47 = vmul.f32 %v633_v7, %v136_v35  ;;  %v159_v35 = vld [vmem:[%s1488_s1 + $0x2c0] sm:$0xff] }
  0x4d   :  { %405 = vst [vmem:[%s1489_s2 + $0x158] sm:$0xff] %v279_v49  ;;  %v302_v49 = vmul.f32 %v650_v13, %v137_v41  ;;  %v160_v41 = vld [vmem:[%s1488_s1 + $0x2c8] sm:$0xff] }
  0x4e   :  { %406 = vst [vmem:[%s1489_s2 + $0x160] sm:$0xff] %v280_v51  ;;  %v303_v51 = vmul.f32 %v659_v15, %v138_v46  ;;  %v161_v46 = vld [vmem:[%s1488_s1 + $0x2d0] sm:$0xff] }
  0x4f   :  { %407 = vst [vmem:[%s1489_s2 + $0x168] sm:$0xff] %v281_v53  ;;  %v304_v53 = vmul.f32 %v668_v19, %v139_v48  ;;  %v162_v48 = vld [vmem:[%s1488_s1 + $0x2d8] sm:$0xff] }
  0x50   :  { %408 = vst [vmem:[%s1489_s2 + $0x170] sm:$0xff] %v282_v56  ;;  %v305_v56 = vmul.f32 %v680_v23, %v140_v50  ;;  %v163_v50 = vld [vmem:[%s1488_s1 + $0x2e0] sm:$0xff] }
  0x51   :  { %409 = vst [vmem:[%s1489_s2 + $0x178] sm:$0xff] %v283_v58  ;;  %v306_v58 = vmul.f32 %v689_v26, %v141_v52  ;;  %v164_v52 = vld [vmem:[%s1488_s1 + $0x2e8] sm:$0xff] }
  0x52   :  { %410 = vst [vmem:[%s1489_s2 + $0x180] sm:$0xff] %v284_v60  ;;  %v307_v60 = vmul.f32 %v698_v29, %v142_v55  ;;  %v165_v55 = vld [vmem:[%s1488_s1 + $0x2f0] sm:$0xff] }
  0x53   :  { %411 = vst [vmem:[%s1489_s2 + $0x188] sm:$0xff] %v285_v62  ;;  %v308_v62 = vmul.f32 %v551_v36, %v143_v57  ;;  %v166_v57 = vld [vmem:[%s1488_s1 + $0x2f8] sm:$0xff] }
  0x54   :  { %412 = vst [vmem:[%s1489_s2 + $0x190] sm:$0xff] %v286_v1  ;;  %v309_v1 = vmul.f32 %v553_v37, %v144_v59  ;;  %v167_v59 = vld [vmem:[%s1488_s1 + $0x300] sm:$0xff] }
  0x55   :  { %413 = vst [vmem:[%s1489_s2 + $0x198] sm:$0xff] %v287_v5  ;;  %v310_v5 = vmul.f32 %v555_v38, %v145_v61  ;;  %v168_v61 = vld [vmem:[%s1488_s1 + $0x308] sm:$0xff] }
  0x56   :  { %414 = vst [vmem:[%s1489_s2 + $0x1a0] sm:$0xff] %v288_v8  ;;  %v311_v8 = vmul.f32 %v560_v40, %v146_v63  ;;  %v169_v63 = vld [vmem:[%s1488_s1 + $0x310] sm:$0xff] }
  0x57   :  { %415 = vst [vmem:[%s1489_s2 + $0x1a8] sm:$0xff] %v289_v10  ;;  %v312_v10 = vmul.f32 %v565_v42, %v147_v4  ;;  %v170_v4 = vld [vmem:[%s1488_s1 + $0x318] sm:$0xff] }
  0x58   :  { %416 = vst [vmem:[%s1489_s2 + $0x1b0] sm:$0xff] %v290_v11  ;;  %v313_v11 = vmul.f32 %v567_v43, %v148_v6  ;;  %v171_v6 = vld [vmem:[%s1488_s1 + $0x320] sm:$0xff] }
  0x59   :  { %417 = vst [vmem:[%s1489_s2 + $0x1b8] sm:$0xff] %v291_v16  ;;  %v314_v16 = vmul.f32 %v569_v44, %v149_v9  ;;  %v172_v9 = vld [vmem:[%s1488_s1 + $0x328] sm:$0xff] }
  0x5a   :  { %418 = vst [vmem:[%s1489_s2 + $0x1c0] sm:$0xff] %v292_v20  ;;  %v315_v20 = vmul.f32 %v588_v54, %v150_v12  ;;  %v173_v12 = vld [vmem:[%s1488_s1 + $0x330] sm:$0xff] }
  0x5b   :  { %419 = vst [vmem:[%s1489_s2 + $0x1c8] sm:$0xff] %v293_v22  ;;  %v316_v22 = vmul.f32 %v616_v0, %v151_v14  ;;  %v174_v14 = vld [vmem:[%s1488_s1 + $0x338] sm:$0xff] }
  0x5c   :  { %420 = vst [vmem:[%s1489_s2 + $0x1d0] sm:$0xff] %v294_v25  ;;  %v317_v25 = vmul.f32 %v621_v2, %v152_v17  ;;  %v175_v17 = vld [vmem:[%s1488_s1 + $0x340] sm:$0xff] }
  0x5d   :  { %421 = vst [vmem:[%s1489_s2 + $0x1d8] sm:$0xff] %v295_v27  ;;  %v318_v27 = vmul.f32 %v623_v3, %v153_v21  ;;  %v176_v21 = vld [vmem:[%s1488_s1 + $0x348] sm:$0xff] }
  0x5e   :  { %422 = vst [vmem:[%s1489_s2 + $0x1e0] sm:$0xff] %v296_v30  ;;  %v319_v30 = vmul.f32 %v633_v7, %v154_v24  ;;  %v177_v24 = vld [vmem:[%s1488_s1 + $0x350] sm:$0xff] }
  0x5f   :  { %423 = vst [vmem:[%s1489_s2 + $0x1e8] sm:$0xff] %v297_v32  ;;  %v320_v32 = vmul.f32 %v650_v13, %v155_v18  ;;  %v178_v18 = vld [vmem:[%s1488_s1 + $0x358] sm:$0xff] }
  0x60   :  { %424 = vst [vmem:[%s1489_s2 + $0x1f0] sm:$0xff] %v298_v34  ;;  %v321_v34 = vmul.f32 %v659_v15, %v156_v28  ;;  %v179_v28 = vld [vmem:[%s1488_s1 + $0x360] sm:$0x1] }
  0x61   :  { %425 = vst [vmem:[%s1489_s2 + $0x1f8] sm:$0xff] %v299_v39  ;;  %v322_v39 = vmul.f32 %v668_v19, %v157_v31  ;;  %v180_v31 = vld [vmem:[%s1488_s1 + $0x368] sm:$0x1] }
  0x62   :  { %426 = vst [vmem:[%s1489_s2 + $0x200] sm:$0xff] %v300_v45  ;;  %v323_v45 = vmul.f32 %v680_v23, %v158_v33  ;;  %v181_v33 = vld [vmem:[%s1488_s1 + $0x370] sm:$0x1] }
  0x63   :  { %427 = vst [vmem:[%s1489_s2 + $0x208] sm:$0xff] %v301_v47  ;;  %v324_v47 = vmul.f32 %v689_v26, %v159_v35  ;;  %v182_v35 = vld [vmem:[%s1488_s1 + $0x378] sm:$0x1] }
  0x64   :  { %428 = vst [vmem:[%s1489_s2 + $0x210] sm:$0xff] %v302_v49  ;;  %v325_v49 = vmul.f32 %v698_v29, %v160_v41  ;;  %v183_v41 = vld [vmem:[%s1488_s1 + $0x380] sm:$0x1] }
  0x65   :  { %429 = vst [vmem:[%s1489_s2 + $0x218] sm:$0xff] %v303_v51  ;;  %v326_v51 = vmul.f32 %v551_v36, %v161_v46  ;;  %v185_v46 = vld [vmem:[%s1488_s1 + $0x390] sm:$0x1] }
  0x66   :  { %430 = vst [vmem:[%s1489_s2 + $0x220] sm:$0xff] %v304_v53  ;;  %v327_v53 = vmul.f32 %v553_v37, %v162_v48  ;;  %v187_v48 = vld [vmem:[%s1488_s1 + $0x3a0] sm:$0x1] }
  0x67   :  { %431 = vst [vmem:[%s1489_s2 + $0x228] sm:$0xff] %v305_v56  ;;  %v328_v56 = vmul.f32 %v555_v38, %v163_v50  ;;  %v189_v50 = vld [vmem:[%s1488_s1 + $0x3b0] sm:$0x1] }
  0x68   :  { %432 = vst [vmem:[%s1489_s2 + $0x230] sm:$0xff] %v306_v58  ;;  %v329_v58 = vmul.f32 %v560_v40, %v164_v52  ;;  %v191_v52 = vld [vmem:[%s1488_s1 + $0x3c0] sm:$0x1] }
  0x69   :  { %433 = vst [vmem:[%s1489_s2 + $0x238] sm:$0xff] %v307_v60  ;;  %v330_v60 = vmul.f32 %v565_v42, %v165_v55  ;;  %v193_v55 = vld [vmem:[%s1488_s1 + $0x3d0] sm:$0x1] }
  0x6a   :  { %434 = vst [vmem:[%s1489_s2 + $0x240] sm:$0xff] %v308_v62  ;;  %v331_v62 = vmul.f32 %v567_v43, %v166_v57  ;;  %v195_v57 = vld [vmem:[%s1488_s1 + $0x3e0] sm:$0x1] }
  0x6b   :  { %435 = vst [vmem:[%s1489_s2 + $0x248] sm:$0xff] %v309_v1  ;;  %v332_v1 = vmul.f32 %v569_v44, %v167_v59  ;;  %v360_v59 = vmul.f32 %v689_v26, %v195_v57 }
  0x6c   :  { %436 = vst [vmem:[%s1489_s2 + $0x250] sm:$0xff] %v310_v5  ;;  %v333_v5 = vmul.f32 %v588_v54, %v168_v61 }
  0x6d   :  { %437 = vst [vmem:[%s1489_s2 + $0x258] sm:$0xff] %v311_v8  ;;  %v334_v8 = vmul.f32 %v616_v0, %v169_v63 }
  0x6e   :  { %438 = vst [vmem:[%s1489_s2 + $0x260] sm:$0xff] %v312_v10  ;;  %v335_v10 = vmul.f32 %v621_v2, %v170_v4 }
  0x6f   :  { %439 = vst [vmem:[%s1489_s2 + $0x268] sm:$0xff] %v313_v11  ;;  %v336_v11 = vmul.f32 %v623_v3, %v171_v6 }
  0x70   :  { %440 = vst [vmem:[%s1489_s2 + $0x270] sm:$0xff] %v314_v16  ;;  %v337_v16 = vmul.f32 %v633_v7, %v172_v9 }
  0x71   :  { %441 = vst [vmem:[%s1489_s2 + $0x278] sm:$0xff] %v315_v20  ;;  %v338_v20 = vmul.f32 %v650_v13, %v173_v12 }
  0x72   :  { %442 = vst [vmem:[%s1489_s2 + $0x280] sm:$0xff] %v316_v22  ;;  %v339_v22 = vmul.f32 %v659_v15, %v174_v14 }
  0x73   :  { %443 = vst [vmem:[%s1489_s2 + $0x288] sm:$0xff] %v317_v25  ;;  %v340_v25 = vmul.f32 %v668_v19, %v175_v17 }
  0x74   :  { %444 = vst [vmem:[%s1489_s2 + $0x290] sm:$0xff] %v318_v27  ;;  %v341_v27 = vmul.f32 %v680_v23, %v176_v21 }
  0x75   :  { %445 = vst [vmem:[%s1489_s2 + $0x298] sm:$0xff] %v319_v30  ;;  %v342_v30 = vmul.f32 %v689_v26, %v177_v24 }
  0x76   :  { %446 = vst [vmem:[%s1489_s2 + $0x2a0] sm:$0xff] %v320_v32  ;;  %v343_v32 = vmul.f32 %v698_v29, %v178_v18 }
  0x77   :  { %447 = vst [vmem:[%s1489_s2 + $0x2a8] sm:$0xff] %v321_v34  ;;  %v344_v34 = vmul.f32 %v551_v36, %v179_v28  ;;  %v346_v36 = vmul.f32 %v555_v38, %v181_v33  ;;  %v348_v38 = vmul.f32 %v565_v42, %v183_v41  ;;  %v350_v42 = vmul.f32 %v569_v44, %v185_v46 }
  0x78   :  { %448 = vst [vmem:[%s1489_s2 + $0x2b0] sm:$0xff] %v322_v39  ;;  %v345_v39 = vmul.f32 %v553_v37, %v180_v31  ;;  %v347_v37 = vmul.f32 %v560_v40, %v182_v35  ;;  %v352_v44 = vmul.f32 %v616_v0, %v187_v48  ;;  %v354_v0 = vmul.f32 %v623_v3, %v189_v50 }
  0x79   :  { %449 = vst [vmem:[%s1489_s2 + $0x2b8] sm:$0xff] %v323_v45  ;;  %v184_v45 = vld [vmem:[%s1488_s1 + $0x388] sm:$0x1]  ;;  %v356_v3 = vmul.f32 %v650_v13, %v191_v52  ;;  %v358_v13 = vmul.f32 %v668_v19, %v193_v55 }
  0x7a   :  { %450 = vst [vmem:[%s1489_s2 + $0x2c0] sm:$0xff] %v324_v47  ;;  %v186_v47 = vld [vmem:[%s1488_s1 + $0x398] sm:$0x1]  ;;  %v349_v40 = vmul.f32 %v567_v43, %v184_v45 }
  0x7b   :  { %451 = vst [vmem:[%s1489_s2 + $0x2c8] sm:$0xff] %v325_v49  ;;  %v188_v49 = vld [vmem:[%s1488_s1 + $0x3a8] sm:$0x1]  ;;  %v351_v43 = vmul.f32 %v588_v54, %v186_v47 }
  0x7c   :  { %452 = vst [vmem:[%s1489_s2 + $0x2d0] sm:$0xff] %v326_v51  ;;  %v190_v51 = vld [vmem:[%s1488_s1 + $0x3b8] sm:$0x1]  ;;  %v353_v54 = vmul.f32 %v621_v2, %v188_v49 }
  0x7d   :  { %453 = vst [vmem:[%s1489_s2 + $0x2d8] sm:$0xff] %v327_v53  ;;  %v192_v53 = vld [vmem:[%s1488_s1 + $0x3c8] sm:$0x1]  ;;  %v355_v2 = vmul.f32 %v633_v7, %v190_v51 }
  0x7e   :  { %454 = vst [vmem:[%s1489_s2 + $0x2e0] sm:$0xff] %v328_v56  ;;  %v194_v56 = vld [vmem:[%s1488_s1 + $0x3d8] sm:$0x1]  ;;  %v357_v7 = vmul.f32 %v659_v15, %v192_v53 }
  0x7f   :  { %455 = vst [vmem:[%s1489_s2 + $0x2e8] sm:$0xff] %v329_v58  ;;  %v196_v58 = vld [vmem:[%s1488_s1 + $0x3e8] sm:$0x1]  ;;  %v359_v15 = vmul.f32 %v680_v23, %v194_v56 }
  0x80   :  { %456 = vst [vmem:[%s1489_s2 + $0x2f0] sm:$0xff] %v330_v60  ;;  %v361_v19 = vmul.f32 %v698_v29, %v196_v58 }
  0x81   :  { %457 = vst [vmem:[%s1489_s2 + $0x2f8] sm:$0xff] %v331_v62 }
  0x82   :  { %458 = vst [vmem:[%s1489_s2 + $0x300] sm:$0xff] %v332_v1 }
  0x83   :  { %459 = vst [vmem:[%s1489_s2 + $0x308] sm:$0xff] %v333_v5 }
  0x84   :  { %460 = vst [vmem:[%s1489_s2 + $0x310] sm:$0xff] %v334_v8 }
  0x85   :  { %461 = vst [vmem:[%s1489_s2 + $0x318] sm:$0xff] %v335_v10 }
  0x86   :  { %462 = vst [vmem:[%s1489_s2 + $0x320] sm:$0xff] %v336_v11 }
  0x87   :  { %463 = vst [vmem:[%s1489_s2 + $0x328] sm:$0xff] %v337_v16 }
  0x88   :  { %464 = vst [vmem:[%s1489_s2 + $0x330] sm:$0xff] %v338_v20 }
  0x89   :  { %465 = vst [vmem:[%s1489_s2 + $0x338] sm:$0xff] %v339_v22 }
  0x8a   :  { %466 = vst [vmem:[%s1489_s2 + $0x340] sm:$0xff] %v340_v25 }
  0x8b   :  { %467 = vst [vmem:[%s1489_s2 + $0x348] sm:$0xff] %v341_v27 }
  0x8c   :  { %468 = vst [vmem:[%s1489_s2 + $0x350] sm:$0xff] %v342_v30 }
  0x8d   :  { %469 = vst [vmem:[%s1489_s2 + $0x358] sm:$0xff] %v343_v32 }
  0x8e   :  { %470 = vst [vmem:[%s1489_s2 + $0x360] sm:$0x1] %v344_v34 }
  0x8f   :  { %471 = vst [vmem:[%s1489_s2 + $0x368] sm:$0x1] %v345_v39 }
  0x90   :  { %472 = vst [vmem:[%s1489_s2 + $0x370] sm:$0x1] %v346_v36 }
  0x91   :  { %473 = vst [vmem:[%s1489_s2 + $0x378] sm:$0x1] %v347_v37 }
  0x92   :  { %474 = vst [vmem:[%s1489_s2 + $0x380] sm:$0x1] %v348_v38 }
  0x93   :  { %475 = vst [vmem:[%s1489_s2 + $0x388] sm:$0x1] %v349_v40 }
  0x94   :  { %476 = vst [vmem:[%s1489_s2 + $0x390] sm:$0x1] %v350_v42 }
  0x95   :  { %477 = vst [vmem:[%s1489_s2 + $0x398] sm:$0x1] %v351_v43 }
  0x96   :  { %478 = vst [vmem:[%s1489_s2 + $0x3a0] sm:$0x1] %v352_v44 }
  0x97   :  { %479 = vst [vmem:[%s1489_s2 + $0x3a8] sm:$0x1] %v353_v54 }
  0x98   :  { %480 = vst [vmem:[%s1489_s2 + $0x3b0] sm:$0x1] %v354_v0 }
  0x99   :  { %481 = vst [vmem:[%s1489_s2 + $0x3b8] sm:$0x1] %v355_v2 }
  0x9a   :  { %482 = vst [vmem:[%s1489_s2 + $0x3c0] sm:$0x1] %v356_v3 }
  0x9b   :  { %483 = vst [vmem:[%s1489_s2 + $0x3c8] sm:$0x1] %v357_v7 }
  0x9c   :  { %484 = vst [vmem:[%s1489_s2 + $0x3d0] sm:$0x1] %v358_v13 }
  0x9d   :  { %485 = vst [vmem:[%s1489_s2 + $0x3d8] sm:$0x1] %v359_v15 }
  0x9e   :  { %486 = vst [vmem:[%s1489_s2 + $0x3e0] sm:$0x1] %v360_v59 }
  0x9f   :  { %487 = vst [vmem:[%s1489_s2 + $0x3e8] sm:$0x1] %v361_v19 }

</bundles_post_ra>
